<compile_context>
chip_gen: v6e
topology: v6e:2x2x1
jax: 0.10.0
libtpu: 0.0.40
codegen_flags: <defaults>
</compile_context>

<pallas_src>
import functools

import jax
import jax.numpy as jnp
from jax.experimental import pallas as pl
from jax.experimental.pallas import tpu as pltpu

HIDDEN = 256
OUT_DIM = 6
OUT_PAD = 8  # small output padding: full-array-width block, tiny HBM writeback


def mlp_kernel(x_ref, w1_ref, b1_ref, w2_ref, b2_ref, w3_ref, b3_ref,
               w4_ref, b4_ref, o_ref):
    """Fused MLP on one (TB, in_dim) batch tile.

    Weights arrive as bf16 (fast MXU operands); biases are f32 and all
    accumulation / element-wise work stays in f32.
    """
    x = x_ref[...].astype(jnp.bfloat16)  # no-op if x is already bf16

    h = jnp.dot(x, w1_ref[...], preferred_element_type=jnp.float32) + b1_ref[...]
    h = jnp.maximum(h, 0.0).astype(jnp.bfloat16)

    h = jnp.dot(h, w2_ref[...], preferred_element_type=jnp.float32) + b2_ref[...]
    h = jnp.maximum(h, 0.0).astype(jnp.bfloat16)

    h = jnp.dot(h, w3_ref[...], preferred_element_type=jnp.float32) + b3_ref[...]
    h = jnp.maximum(h, 0.0).astype(jnp.bfloat16)

    out = jnp.dot(h, w4_ref[...], preferred_element_type=jnp.float32) + b4_ref[...]
    o_ref[...] = out.astype(o_ref.dtype)


def _round_up(x, m):
    return (x + m - 1) // m * m


@functools.partial(jax.jit, static_argnames=("block_b",))
def simple_model_forward(x, params, block_b=2048):
    """Pallas wrapper. x: (B, n*18) f32 or bf16. params: dict of f32 weights/biases."""
    B, in_dim = x.shape

    # Batch tile: multiple of 8 (f32 sublanes), capped at block_b, and capped at
    # ceil(B/2) so the grid has >=2 tiles whenever B > 8 (keeps both v7x TCs busy).
    TB = min(block_b, max(8, _round_up(-(-B // 2), 8)))
    grid = (pl.cdiv(B, TB),)  # partial final block handled by Pallas masking

    # bf16 matmul operands (halves weight DMA, full MXU rate); f32 biases.
    w1 = params["w1"].astype(jnp.bfloat16)
    w2 = params["w2"].astype(jnp.bfloat16)
    w3 = params["w3"].astype(jnp.bfloat16)
    # Lane padding 6 -> 8 on the last layer only (negligible extra FLOPs/DMA).
    w4 = jnp.pad(params["w4"], ((0, 0), (0, OUT_PAD - OUT_DIM))).astype(jnp.bfloat16)
    b1, b2, b3 = params["b1"], params["b2"], params["b3"]
    b4 = jnp.pad(params["b4"], ((0, 0), (0, OUT_PAD - OUT_DIM)))

    # Weights/biases: index_map always (0, 0) -> Pallas elides re-DMA across
    # steps, so they stay VMEM-resident.
    def resident(shape):
        return pl.BlockSpec(shape, lambda i: (0, 0))

    out_padded = pl.pallas_call(
        mlp_kernel,
        out_shape=jax.ShapeDtypeStruct((B, OUT_PAD), jnp.float32),
        grid=grid,
        in_specs=[
            pl.BlockSpec((TB, in_dim), lambda i: (i, 0)),         # x (batch tiled)
            resident((in_dim, HIDDEN)), resident((1, HIDDEN)),    # w1, b1
            resident((HIDDEN, HIDDEN)), resident((1, HIDDEN)),    # w2, b2
            resident((HIDDEN, HIDDEN)), resident((1, HIDDEN)),    # w3, b3
            resident((HIDDEN, OUT_PAD)), resident((1, OUT_PAD)),  # w4, b4 (padded)
        ],
        out_specs=pl.BlockSpec((TB, OUT_PAD), lambda i: (i, 0)),
        compiler_params=pltpu.CompilerParams(
            dimension_semantics=("parallel",),  # shard batch tiles across TCs (v7x)
        ),
    )(x, w1, b1, w2, b2, w3, b3, w4, b4)

    return out_padded[:, :OUT_DIM]


def init_params(n, key):
    """Deterministic init matching the PyTorch module's shapes.

    PyTorch nn.Linear(in, out) default: U(-1/sqrt(in), 1/sqrt(in)).
    Weights stored as (in, out) for the kernel; biases as (1, out).
    """
    dims = [(n * 18, HIDDEN), (HIDDEN, HIDDEN), (HIDDEN, HIDDEN), (HIDDEN, OUT_DIM)]
    params = {}
    keys = jax.random.split(key, 2 * len(dims))
    for i, (fan_in, fan_out) in enumerate(dims):
        bound = 1.0 / (fan_in ** 0.5)
        params[f"w{i + 1}"] = jax.random.uniform(
            keys[2 * i], (fan_in, fan_out), minval=-bound, maxval=bound,
            dtype=jnp.float32)
        params[f"b{i + 1}"] = jax.random.uniform(
            keys[2 * i + 1], (1, fan_out), minval=-bound, maxval=bound,
            dtype=jnp.float32)
    return params


def reference_forward_f32(x, params):
    h = jnp.maximum(x @ params["w1"] + params["b1"], 0.0)
    h = jnp.maximum(h @ params["w2"] + params["b2"], 0.0)
    h = jnp.maximum(h @ params["w3"] + params["b3"], 0.0)
    return h @ params["w4"] + params["b4"]


def reference_forward_bf16(x, params):
    """Mirrors the kernel numerics: bf16 operands, f32 accumulation."""
    def dot(a, w):
        return jnp.dot(a.astype(jnp.bfloat16), w.astype(jnp.bfloat16),
                       preferred_element_type=jnp.float32)
    h = jnp.maximum(dot(x, params["w1"]) + params["b1"], 0.0)
    h = jnp.maximum(dot(h, params["w2"]) + params["b2"], 0.0)
    h = jnp.maximum(dot(h, params["w3"]) + params["b3"], 0.0)
    return dot(h, params["w4"]) + params["b4"]


if __name__ == "__main__":
    n = 4          # SimpleModel(n=4) -> input dim = n*18 = 72
    batch = 8

    key = jax.random.PRNGKey(0)
    k_params, k_x = jax.random.split(key)

    params = init_params(n, k_params)
    x = jax.random.normal(k_x, (batch, n * 18), dtype=jnp.float32)

    out = simple_model_forward(x, params)
    out = jax.block_until_ready(out)

    ref_bf16 = reference_forward_bf16(x, params)
    ref_f32 = reference_forward_f32(x, params)

    assert out.shape == (batch, 6), out.shape
    # Exact check vs a reference using the same bf16-operand numerics.
    assert jnp.allclose(out, ref_bf16, atol=1e-3, rtol=1e-3), "mismatch vs bf16 reference"
    # Loose check vs the pure-f32 PyTorch-equivalent forward.
    # TODO(synk): keep an f32-operand path behind a flag if bit-parity with the
    # f32 PyTorch module is ever required.
    assert jnp.allclose(out, ref_f32, atol=5e-2, rtol=5e-2), "mismatch vs f32 reference"

    # Exercise the partial-block path (B not a multiple of the tile).
    x2 = jax.random.normal(jax.random.PRNGKey(1), (10, n * 18), dtype=jnp.float32)
    out2 = jax.block_until_ready(simple_model_forward(x2, params))
    assert out2.shape == (10, 6), out2.shape
    assert jnp.allclose(out2, reference_forward_bf16(x2, params),
                        atol=1e-3, rtol=1e-3), "mismatch on partial-block batch"

    print("KERNEL_OK")
</pallas_src>

<mosaic_0001>
module attributes {stable_mosaic.version = 11 : i64} {
  func.func @mlp_kernel(%arg0: i32, %arg1: memref<8x72xf32, #tpu.memory_space<vmem>>, %arg2: memref<72x256xbf16, #tpu.memory_space<vmem>>, %arg3: memref<1x256xf32, #tpu.memory_space<vmem>>, %arg4: memref<256x256xbf16, #tpu.memory_space<vmem>>, %arg5: memref<1x256xf32, #tpu.memory_space<vmem>>, %arg6: memref<256x256xbf16, #tpu.memory_space<vmem>>, %arg7: memref<1x256xf32, #tpu.memory_space<vmem>>, %arg8: memref<256x8xbf16, #tpu.memory_space<vmem>>, %arg9: memref<1x8xf32, #tpu.memory_space<vmem>>, %arg10: memref<8x8xf32, #tpu.memory_space<vmem>>) attributes {dimension_semantics = [#tpu.dimension_semantics<parallel>], iteration_bounds = array<i64: 1>, scalar_prefetch = 0 : i64, scratch_operands = 0 : i64, tpu.core_type = #tpu.core_type<tc>, window_params = [{transform_indices = @transform_0, window_bounds = array<i64: 8, 72>}, {pipeline_mode = #tpu.pipeline_mode<synchronous>, transform_indices = @transform_1, window_bounds = array<i64: 72, 256>}, {pipeline_mode = #tpu.pipeline_mode<synchronous>, transform_indices = @transform_2, window_bounds = array<i64: 1, 256>}, {pipeline_mode = #tpu.pipeline_mode<synchronous>, transform_indices = @transform_3, window_bounds = array<i64: 256, 256>}, {pipeline_mode = #tpu.pipeline_mode<synchronous>, transform_indices = @transform_4, window_bounds = array<i64: 1, 256>}, {pipeline_mode = #tpu.pipeline_mode<synchronous>, transform_indices = @transform_5, window_bounds = array<i64: 256, 256>}, {pipeline_mode = #tpu.pipeline_mode<synchronous>, transform_indices = @transform_6, window_bounds = array<i64: 1, 256>}, {pipeline_mode = #tpu.pipeline_mode<synchronous>, transform_indices = @transform_7, window_bounds = array<i64: 256, 8>}, {pipeline_mode = #tpu.pipeline_mode<synchronous>, transform_indices = @transform_8, window_bounds = array<i64: 1, 8>}, {transform_indices = @transform_9, window_bounds = array<i64: 8, 8>}]} {
    %c0 = arith.constant 0 : index
    %c0_0 = arith.constant 0 : index
    %0 = vector.load %arg1[%c0, %c0_0] : memref<8x72xf32, #tpu.memory_space<vmem>>, vector<8x72xf32>
    %1 = arith.truncf %0 : vector<8x72xf32> to vector<8x72xbf16>
    %c0_1 = arith.constant 0 : index
    %c0_2 = arith.constant 0 : index
    %2 = vector.load %arg2[%c0_1, %c0_2] : memref<72x256xbf16, #tpu.memory_space<vmem>>, vector<72x256xbf16>
    %cst = arith.constant dense<0.000000e+00> : vector<8x256xf32>
    %3 = tpu.matmul %1, %2, %cst {dimension_numbers = #tpu.dot_dimension_numbers<[1], [0], [0], [1], [0, 0, 1, 1], [], []>} : vector<8x72xbf16>, vector<72x256xbf16>, vector<8x256xf32> -> vector<8x256xf32>
    %c0_3 = arith.constant 0 : index
    %c0_4 = arith.constant 0 : index
    %4 = vector.load %arg3[%c0_3, %c0_4] : memref<1x256xf32, #tpu.memory_space<vmem>>, vector<1x256xf32>
    %5 = vector.broadcast %4 : vector<1x256xf32> to vector<8x256xf32>
    %6 = arith.addf %3, %5 : vector<8x256xf32>
    %cst_5 = arith.constant 0.000000e+00 : f32
    %7 = vector.broadcast %cst_5 : f32 to vector<8x256xf32>
    %8 = arith.maximumf %6, %7 : vector<8x256xf32>
    %9 = arith.truncf %8 : vector<8x256xf32> to vector<8x256xbf16>
    %c0_6 = arith.constant 0 : index
    %c0_7 = arith.constant 0 : index
    %10 = vector.load %arg4[%c0_6, %c0_7] : memref<256x256xbf16, #tpu.memory_space<vmem>>, vector<256x256xbf16>
    %cst_8 = arith.constant dense<0.000000e+00> : vector<8x256xf32>
    %11 = tpu.matmul %9, %10, %cst_8 {dimension_numbers = #tpu.dot_dimension_numbers<[1], [0], [0], [1], [0, 0, 1, 1], [], []>} : vector<8x256xbf16>, vector<256x256xbf16>, vector<8x256xf32> -> vector<8x256xf32>
    %c0_9 = arith.constant 0 : index
    %c0_10 = arith.constant 0 : index
    %12 = vector.load %arg5[%c0_9, %c0_10] : memref<1x256xf32, #tpu.memory_space<vmem>>, vector<1x256xf32>
    %13 = vector.broadcast %12 : vector<1x256xf32> to vector<8x256xf32>
    %14 = arith.addf %11, %13 : vector<8x256xf32>
    %cst_11 = arith.constant 0.000000e+00 : f32
    %15 = vector.broadcast %cst_11 : f32 to vector<8x256xf32>
    %16 = arith.maximumf %14, %15 : vector<8x256xf32>
    %17 = arith.truncf %16 : vector<8x256xf32> to vector<8x256xbf16>
    %c0_12 = arith.constant 0 : index
    %c0_13 = arith.constant 0 : index
    %18 = vector.load %arg6[%c0_12, %c0_13] : memref<256x256xbf16, #tpu.memory_space<vmem>>, vector<256x256xbf16>
    %cst_14 = arith.constant dense<0.000000e+00> : vector<8x256xf32>
    %19 = tpu.matmul %17, %18, %cst_14 {dimension_numbers = #tpu.dot_dimension_numbers<[1], [0], [0], [1], [0, 0, 1, 1], [], []>} : vector<8x256xbf16>, vector<256x256xbf16>, vector<8x256xf32> -> vector<8x256xf32>
    %c0_15 = arith.constant 0 : index
    %c0_16 = arith.constant 0 : index
    %20 = vector.load %arg7[%c0_15, %c0_16] : memref<1x256xf32, #tpu.memory_space<vmem>>, vector<1x256xf32>
    %21 = vector.broadcast %20 : vector<1x256xf32> to vector<8x256xf32>
    %22 = arith.addf %19, %21 : vector<8x256xf32>
    %cst_17 = arith.constant 0.000000e+00 : f32
    %23 = vector.broadcast %cst_17 : f32 to vector<8x256xf32>
    %24 = arith.maximumf %22, %23 : vector<8x256xf32>
    %25 = arith.truncf %24 : vector<8x256xf32> to vector<8x256xbf16>
    %c0_18 = arith.constant 0 : index
    %c0_19 = arith.constant 0 : index
    %26 = vector.load %arg8[%c0_18, %c0_19] : memref<256x8xbf16, #tpu.memory_space<vmem>>, vector<256x8xbf16>
    %cst_20 = arith.constant dense<0.000000e+00> : vector<8x8xf32>
    %27 = tpu.matmul %25, %26, %cst_20 {dimension_numbers = #tpu.dot_dimension_numbers<[1], [0], [0], [1], [0, 0, 1, 1], [], []>} : vector<8x256xbf16>, vector<256x8xbf16>, vector<8x8xf32> -> vector<8x8xf32>
    %c0_21 = arith.constant 0 : index
    %c0_22 = arith.constant 0 : index
    %28 = vector.load %arg9[%c0_21, %c0_22] : memref<1x8xf32, #tpu.memory_space<vmem>>, vector<1x8xf32>
    %29 = vector.broadcast %28 : vector<1x8xf32> to vector<8x8xf32>
    %30 = arith.addf %27, %29 : vector<8x8xf32>
    %c0_23 = arith.constant 0 : index
    %c0_24 = arith.constant 0 : index
    %31 = vector.load %arg10[%c0_23, %c0_24] : memref<8x8xf32, #tpu.memory_space<vmem>>, vector<8x8xf32>
    tpu.vector_store %arg10[%c0_23, %c0_24], %30 {strides = array<i32>} : memref<8x8xf32, #tpu.memory_space<vmem>>, vector<8x8xf32>,
    return
  }
  func.func @transform_0(%arg0: i32) -> (i32, i32) {
    %c0_i32 = arith.constant 0 : i32
    %c0_i32_0 = arith.constant 0 : i32
    return %arg0, %c0_i32 : i32, i32
  }
  func.func @transform_1(%arg0: i32) -> (i32, i32) {
    %c0_i32 = arith.constant 0 : i32
    %c0_i32_0 = arith.constant 0 : i32
    %c0_i32_1 = arith.constant 0 : i32
    return %c0_i32, %c0_i32_0 : i32, i32
  }
  func.func @transform_2(%arg0: i32) -> (i32, i32) {
    %c0_i32 = arith.constant 0 : i32
    %c0_i32_0 = arith.constant 0 : i32
    %c0_i32_1 = arith.constant 0 : i32
    return %c0_i32, %c0_i32_0 : i32, i32
  }
  func.func @transform_3(%arg0: i32) -> (i32, i32) {
    %c0_i32 = arith.constant 0 : i32
    %c0_i32_0 = arith.constant 0 : i32
    %c0_i32_1 = arith.constant 0 : i32
    return %c0_i32, %c0_i32_0 : i32, i32
  }
  func.func @transform_4(%arg0: i32) -> (i32, i32) {
    %c0_i32 = arith.constant 0 : i32
    %c0_i32_0 = arith.constant 0 : i32
    %c0_i32_1 = arith.constant 0 : i32
    return %c0_i32, %c0_i32_0 : i32, i32
  }
  func.func @transform_5(%arg0: i32) -> (i32, i32) {
    %c0_i32 = arith.constant 0 : i32
    %c0_i32_0 = arith.constant 0 : i32
    %c0_i32_1 = arith.constant 0 : i32
    return %c0_i32, %c0_i32_0 : i32, i32
  }
  func.func @transform_6(%arg0: i32) -> (i32, i32) {
    %c0_i32 = arith.constant 0 : i32
    %c0_i32_0 = arith.constant 0 : i32
    %c0_i32_1 = arith.constant 0 : i32
    return %c0_i32, %c0_i32_0 : i32, i32
  }
  func.func @transform_7(%arg0: i32) -> (i32, i32) {
    %c0_i32 = arith.constant 0 : i32
    %c0_i32_0 = arith.constant 0 : i32
    %c0_i32_1 = arith.constant 0 : i32
    return %c0_i32, %c0_i32_0 : i32, i32
  }
  func.func @transform_8(%arg0: i32) -> (i32, i32) {
    %c0_i32 = arith.constant 0 : i32
    %c0_i32_0 = arith.constant 0 : i32
    %c0_i32_1 = arith.constant 0 : i32
    return %c0_i32, %c0_i32_0 : i32, i32
  }
  func.func @transform_9(%arg0: i32) -> (i32, i32) {
    %c0_i32 = arith.constant 0 : i32
    %c0_i32_0 = arith.constant 0 : i32
    return %arg0, %c0_i32 : i32, i32
  }
}

</mosaic_0001>

<bundles_post_ra>
// kernel: simple_model_forward.1
= control target key start
LH: loop header
LB: loop body
LE: loop exit
PB: predicated region body
PF: predicated region fallthrough
CT: control target
= control target key end

     0   :  { %vm106_vm0 = vcmask 1043456   ;;  %v1112_v4 = vmov 0   ;;  %vm102_vm1 = vcmask 588800   ;;  %s1459_s0 = inlined_call_operand.vmem [shape: f32[8,72], index: 0, kind: input, shape index: {}]   ;;  %s1460_s1 = inlined_call_operand.vmem [shape: bf16[72,256], index: 1, kind: input, shape index: {}]   ;;  %s1461_s2 = inlined_call_operand.vmem [shape: f32[1,256], index: 2, kind: input, shape index: {}]   ;;  %s1462_s3 = inlined_call_operand.vmem [shape: bf16[256,256], index: 3, kind: input, shape index: {}]   ;;  %s1463_s4 = inlined_call_operand.vmem [shape: f32[1,256], index: 4, kind: input, shape index: {}]   ;;  %s1464_s5 = inlined_call_operand.vmem [shape: bf16[256,256], index: 5, kind: input, shape index: {}]   ;;  %s1465_s6 = inlined_call_operand.vmem [shape: f32[1,256], index: 6, kind: input, shape index: {}]   ;;  %s1466_s7 = inlined_call_operand.vmem [shape: bf16[256,8], index: 7, kind: input, shape index: {}]   ;;  %s1467_s8 = inlined_call_operand.vmem [shape: f32[1,8], index: 8, kind: input, shape index: {}]   ;;  %s1468_s9 = inlined_call_operand.hbm [shape: f32[8,8], index: 9, kind: output, shape index: {}]  }
   0x1   :  { %v44_v0 = vld [vmem:[%s1460_s1 + $0x40] sm:$0xff]  ;;  %v966_v3 = vld [vmem:[%s1460_s1 + $0x34] ss:$8 sps:$4 sm:$0xff]   ;;  %145 = vmatprep.mubr.bf16.mxu0 %v1112_v4  ;;  %v968_v6 = vld [vmem:[%s1460_s1 + $0x30] ss:$8 sps:$4 sm:$0xff]  }
   0x2   :  { %v856_v1 = vcombine.high %v44_v0, %v44_v0  ;;  %v855_v2 = vcombine.low %v44_v0, %v44_v0  ;;  %v969_v7 = vld [vmem:[%s1460_s1 + $0x24] ss:$8 sps:$4 sm:$0xff]   ;;  %v978_v8 = vld [vmem:[%s1462_s3 + $0x74] ss:$8 sps:$4 sm:$0xff]   ;;  %v980_v9 = vld [vmem:[%s1462_s3 + $0x70] ss:$8 sps:$4 sm:$0xff]  }
   0x3   :  { %v971_v10 = vld [vmem:[%s1460_s1 + $0x20] ss:$8 sps:$4 sm:$0xff]   ;;  %362 = vmatprep.subr.bf16.mxu1 %v978_v8  ;;  %v981_v11 = vld [vmem:[%s1462_s3 + $0x64] ss:$8 sps:$4 sm:$0xff]   ;;  %v972_v12 = vld [vmem:[%s1460_s1 + $0x14] ss:$8 sps:$4 sm:$0xff]  }
   0x4   :  { %857 = vmatprep.subr.msk.bf16.mxu0 %vm106_vm0, %v856_v1  ;;  %v108_v5 = vsel %vm106_vm0, %v855_v2, 0  ;;  %363 = vmatpush1.bf16.msra.mxu1 %v980_v9  ;;  %v983_v13 = vld [vmem:[%s1462_s3 + $0x60] ss:$8 sps:$4 sm:$0xff]   ;;  %v984_v14 = vld [vmem:[%s1462_s3 + $0x54] ss:$8 sps:$4 sm:$0xff]  }
   0x5   :  { %120 = vmatpush1.bf16.msra.mxu0 %v108_v5  ;;  %364 = vmatprep.subr.bf16.mxu1 %v981_v11  ;;  %v974_v15 = vld [vmem:[%s1460_s1 + $0x10] ss:$8 sps:$4 sm:$0xff]   ;;  %v975_v16 = vld [vmem:[%s1460_s1 + $0x4] ss:$8 sps:$4 sm:$0xff]   ;;  %v977_v19 = vld [vmem:[%s1460_s1] ss:$8 sps:$4 sm:$0xff]  }
   0x6   :  { %121 = vmatprep.subr.bf16.mxu0 %v966_v3  ;;  %v986_v17 = vld [vmem:[%s1462_s3 + $0x50] ss:$8 sps:$4 sm:$0xff]   ;;  %v987_v18 = vld [vmem:[%s1462_s3 + $0x44] ss:$8 sps:$4 sm:$0xff]   ;;  %v989_v21 = vld [vmem:[%s1462_s3 + $0x40] ss:$8 sps:$4 sm:$0xff]  }
   0x7   :  { %v34_v20 = vld [vmem:[%s1459_s0] sm:$0xff]  ;;  %v990_v22 = vld [vmem:[%s1462_s3 + $0x34] ss:$8 sps:$4 sm:$0xff]   ;;  %v992_v24 = vld [vmem:[%s1462_s3 + $0x30] ss:$8 sps:$4 sm:$0xff]  }
   0x8   :  { %365 = vmatpush1.bf16.msra.mxu1 %v983_v13  ;;  %v35_v23 = vpack.c.bf16 %v34_v20, %v34_v20  ;;  %v993_v25 = vld [vmem:[%s1462_s3 + $0x24] ss:$8 sps:$4 sm:$0xff]   ;;  %v995_v26 = vld [vmem:[%s1462_s3 + $0x20] ss:$8 sps:$4 sm:$0xff]   ;;  %v996_v27 = vld [vmem:[%s1462_s3 + $0x14] ss:$8 sps:$4 sm:$0xff]  }
   0x9   :  { %122 = vmatpush1.bf16.msra.mxu0 %v968_v6  ;;  %366 = vmatprep.subr.bf16.mxu1 %v984_v14  ;;  %v998_v28 = vld [vmem:[%s1462_s3 + $0x10] ss:$8 sps:$4 sm:$0xff]   ;;  %v999_v29 = vld [vmem:[%s1462_s3 + $0x4] ss:$8 sps:$4 sm:$0xff]   ;;  %v1001_v30 = vld [vmem:[%s1462_s3] ss:$8 sps:$4 sm:$0xff]  }
   0xa   :  { %123 = vmatprep.subr.bf16.mxu0 %v969_v7  ;;  %v1002_v31 = vld [vmem:[%s1462_s3 + $0xf4] ss:$8 sps:$4 sm:$0xff]   ;;  %v1004_v32 = vld [vmem:[%s1462_s3 + $0xf0] ss:$8 sps:$4 sm:$0xff]   ;;  %v1005_v33 = vld [vmem:[%s1462_s3 + $0xe4] ss:$8 sps:$4 sm:$0xff]  }
   0xb   :  { %v1007_v34 = vld [vmem:[%s1462_s3 + $0xe0] ss:$8 sps:$4 sm:$0xff]   ;;  %v1008_v35 = vld [vmem:[%s1462_s3 + $0xd4] ss:$8 sps:$4 sm:$0xff]   ;;  %v1010_v36 = vld [vmem:[%s1462_s3 + $0xd0] ss:$8 sps:$4 sm:$0xff]  }
   0xc   :  { %367 = vmatpush1.bf16.msra.mxu1 %v986_v17  ;;  %v1011_v37 = vld [vmem:[%s1462_s3 + $0xc4] ss:$8 sps:$4 sm:$0xff]  }
   0xd   :  { %124 = vmatpush1.bf16.msra.mxu0 %v971_v10  ;;  %368 = vmatprep.subr.bf16.mxu1 %v987_v18 }
   0xe   :  { %125 = vmatprep.subr.bf16.mxu0 %v972_v12 }
  0x10   :  { %369 = vmatpush1.bf16.msra.mxu1 %v989_v21 }
  0x11   :  { %126 = vmatpush1.bf16.msra.mxu0 %v974_v15  ;;  %370 = vmatprep.subr.bf16.mxu1 %v990_v22 }
  0x12   :  { %127 = vmatprep.subr.bf16.mxu0 %v975_v16 }
  0x14   :  { %371 = vmatpush1.bf16.msra.mxu1 %v992_v24 }
  0x15   :  { %128 = vmatpush1.bf16.msra.mxu0 %v977_v19  ;;  %372 = vmatprep.subr.bf16.mxu1 %v993_v25 }
  0x18   :  { %858 = vmatmul.mubr.msk.bf16.vlgmr.msra.gmra.mxu0 %vm102_vm1, %v35_v23  ;;  %373 = vmatpush1.bf16.msra.mxu1 %v995_v26 }
  0x19   :  { %374 = vmatprep.subr.bf16.mxu1 %v996_v27 }
  0x1c   :  { %375 = vmatpush1.bf16.msra.mxu1 %v998_v28 }
  0x1d   :  { %376 = vmatprep.subr.bf16.mxu1 %v999_v29 }
  0x20   :  { %377 = vmatpush1.bf16.msra.mxu1 %v1001_v30 }
  0x21   :  { %378 = vmatprep.subr.bf16.mxu1 %v1002_v31 }
  0x24   :  { %379 = vmatpush2.bf16.msra.mxu1 %v1004_v32 }
  0x25   :  { %380 = vmatprep.subr.bf16.mxu1 %v1005_v33 }
  0x28   :  { %381 = vmatpush2.bf16.msra.mxu1 %v1007_v34 }
  0x29   :  { %382 = vmatprep.subr.bf16.mxu1 %v1008_v35 }
  0x2a   :  { %14 = vsyncpa [#allocation3], 0  ;;  %v1013_v38 = vld [vmem:[%s1462_s3 + $0xc0] ss:$8 sps:$4 sm:$0xff]   ;;  %v1014_v39 = vld [vmem:[%s1462_s3 + $0xb4] ss:$8 sps:$4 sm:$0xff]   ;;  %v47_v11 = vlaneseq }
  0x2b   :  { %v1016_v40 = vld [vmem:[%s1462_s3 + $0xb0] ss:$8 sps:$4 sm:$0xff]   ;;  %v1017_v41 = vld [vmem:[%s1462_s3 + $0xa4] ss:$8 sps:$4 sm:$0xff]   ;;  %v1019_v42 = vld [vmem:[%s1462_s3 + $0xa0] ss:$8 sps:$4 sm:$0xff]  }
  0x2c   :  { %383 = vmatpush2.bf16.msra.mxu1 %v1010_v36  ;;  %v1020_v43 = vld [vmem:[%s1462_s3 + $0x94] ss:$8 sps:$4 sm:$0xff]   ;;  %v1022_v44 = vld [vmem:[%s1462_s3 + $0x90] ss:$8 sps:$4 sm:$0xff]   ;;  %v1023_v45 = vld [vmem:[%s1462_s3 + $0x84] ss:$8 sps:$4 sm:$0xff]  }
  0x2d   :  { %384 = vmatprep.subr.bf16.mxu1 %v1011_v37  ;;  %v1025_v46 = vld [vmem:[%s1462_s3 + $0x80] ss:$8 sps:$4 sm:$0xff]   ;;  %v1026_v47 = vld [vmem:[%s1464_s5 + $0x70] ss:$8 sps:$4 sm:$0xff]   ;;  %v1028_v48 = vld [vmem:[%s1464_s5 + $0x74] ss:$8 sps:$4 sm:$0xff]  }
  0x2e   :  { %v1031_v49 = vld [vmem:[%s1464_s5 + $0x64] ss:$8 sps:$4 sm:$0xff]   ;;  %611 = vmatprep.subr.bf16.mxu0 %v1028_v48  ;;  %v1029_v50 = vld [vmem:[%s1464_s5 + $0x60] ss:$8 sps:$4 sm:$0xff]   ;;  %v1034_v51 = vld [vmem:[%s1464_s5 + $0x54] ss:$8 sps:$4 sm:$0xff]  }
  0x2f   :  { %612 = vmatpush1.bf16.msra.mxu0 %v1026_v47  ;;  %v1032_v52 = vld [vmem:[%s1464_s5 + $0x50] ss:$8 sps:$4 sm:$0xff]   ;;  %v1037_v53 = vld [vmem:[%s1464_s5 + $0x44] ss:$8 sps:$4 sm:$0xff]   ;;  %v1035_v54 = vld [vmem:[%s1464_s5 + $0x40] ss:$8 sps:$4 sm:$0xff]  }
  0x30   :  { %385 = vmatpush2.bf16.msra.mxu1 %v1013_v38  ;;  %613 = vmatprep.subr.bf16.mxu0 %v1031_v49  ;;  %v1040_v55 = vld [vmem:[%s1464_s5 + $0x34] ss:$8 sps:$4 sm:$0xff]   ;;  %v1038_v56 = vld [vmem:[%s1464_s5 + $0x30] ss:$8 sps:$4 sm:$0xff]   ;;  %v1043_v57 = vld [vmem:[%s1464_s5 + $0x24] ss:$8 sps:$4 sm:$0xff]  }
  0x31   :  { %386 = vmatprep.subr.bf16.mxu1 %v1014_v39  ;;  %v1041_v58 = vld [vmem:[%s1464_s5 + $0x20] ss:$8 sps:$4 sm:$0xff]   ;;  %v1046_v59 = vld [vmem:[%s1464_s5 + $0x14] ss:$8 sps:$4 sm:$0xff]   ;;  %v1044_v60 = vld [vmem:[%s1464_s5 + $0x10] ss:$8 sps:$4 sm:$0xff]  }
  0x32   :  { %v1049_v61 = vld [vmem:[%s1464_s5 + $0x4] ss:$8 sps:$4 sm:$0xff]   ;;  %v1047_v62 = vld [vmem:[%s1464_s5] ss:$8 sps:$4 sm:$0xff]   ;;  %v1052_v63 = vld [vmem:[%s1464_s5 + $0xf4] ss:$8 sps:$4 sm:$0xff]  }
  0x33   :  { %614 = vmatpush1.bf16.msra.mxu0 %v1029_v50  ;;  %v1050_v0 = vld [vmem:[%s1464_s5 + $0xf0] ss:$8 sps:$4 sm:$0xff]   ;;  %v1055_v1 = vld [vmem:[%s1464_s5 + $0xe4] ss:$8 sps:$4 sm:$0xff]   ;;  %v1053_v2 = vld [vmem:[%s1464_s5 + $0xe0] ss:$8 sps:$4 sm:$0xff]  }
  0x34   :  { %387 = vmatpush2.bf16.msra.mxu1 %v1016_v40  ;;  %615 = vmatprep.subr.bf16.mxu0 %v1034_v51  ;;  %v1058_v3 = vld [vmem:[%s1464_s5 + $0xd4] ss:$8 sps:$4 sm:$0xff]   ;;  %v1056_v4 = vld [vmem:[%s1464_s5 + $0xd0] ss:$8 sps:$4 sm:$0xff]   ;;  %v1061_v5 = vld [vmem:[%s1464_s5 + $0xc4] ss:$8 sps:$4 sm:$0xff]  }
  0x35   :  { %388 = vmatprep.subr.bf16.mxu1 %v1017_v41  ;;  %v1059_v6 = vld [vmem:[%s1464_s5 + $0xc0] ss:$8 sps:$4 sm:$0xff]   ;;  %v1064_v7 = vld [vmem:[%s1464_s5 + $0xb4] ss:$8 sps:$4 sm:$0xff]   ;;  %v1062_v8 = vld [vmem:[%s1464_s5 + $0xb0] ss:$8 sps:$4 sm:$0xff]  }
  0x36   :  { %v1067_v9 = vld [vmem:[%s1464_s5 + $0xa4] ss:$8 sps:$4 sm:$0xff]   ;;  %v1065_v10 = vld [vmem:[%s1464_s5 + $0xa0] ss:$8 sps:$4 sm:$0xff]   ;;  %v48_v12 = vshrl.u32 %v47_v11, 7  ;;  %v1074_v32 = vld [vmem:[%s1466_s7 + $0x78] sm:$0xff]  }
  0x37   :  { %616 = vmatpush1.bf16.msra.mxu0 %v1032_v52  ;;  %v45_v14 = vld [vmem:[%s1461_s2] sm:$0x3]  ;;  %v1070_v28 = vld [vmem:[%s1464_s5 + $0x94] ss:$8 sps:$4 sm:$0xff]   ;;  %v1068_v29 = vld [vmem:[%s1464_s5 + $0x90] ss:$8 sps:$4 sm:$0xff]  }
  0x38   :  { %389 = vmatpush2.bf16.msra.mxu1 %v1019_v42  ;;  %617 = vmatprep.subr.bf16.mxu0 %v1037_v53  ;;  %v1374_v13 = vsub.s32 0, %v48_v12  ;;  %v1379_v15 = vsub.s32 1, %v48_v12  ;;  %v1073_v30 = vld [vmem:[%s1464_s5 + $0x84] ss:$8 sps:$4 sm:$0xff]   ;;  %v1071_v31 = vld [vmem:[%s1464_s5 + $0x80] ss:$8 sps:$4 sm:$0xff]  }
  0x39   :  { %390 = vmatprep.subr.bf16.mxu1 %v1020_v43  ;;  %v1075_v33 = vld [vmem:[%s1466_s7 + $0x38] sm:$0xff]   ;;  %v1076_v34 = vld [vmem:[%s1466_s7 + $0x70] sm:$0xff]   ;;  %v1078_v36 = vld [vmem:[%s1466_s7 + $0x68] sm:$0xff]   ;;  %vm831_vm2 = vcmask 64512  }
  0x3a   :  { %v50_v16 = vrot.slane %v45_v14, %v1374_v13  ;;  %v54_v17 = vrot.slane %v45_v14, %v1379_v15  ;;  %v1077_v35 = vld [vmem:[%s1466_s7 + $0x30] sm:$0xff]   ;;  %v1079_v37 = vld [vmem:[%s1466_s7 + $0x28] sm:$0xff]   ;;  %v1080_v38 = vld [vmem:[%s1466_s7 + $0x60] sm:$0xff]  }
  0x3b   :  { %618 = vmatpush1.bf16.msra.mxu0 %v1035_v54  ;;  %v1081_v39 = vld [vmem:[%s1466_s7 + $0x20] sm:$0xff]   ;;  %v1082_v40 = vld [vmem:[%s1466_s7 + $0x58] sm:$0xff]   ;;  %v1084_v42 = vld [vmem:[%s1466_s7 + $0x50] sm:$0xff]  }
  0x3c   :  { %391 = vmatpush2.bf16.msra.mxu1 %v1022_v44  ;;  %619 = vmatprep.subr.bf16.mxu0 %v1040_v55  ;;  %v1083_v41 = vld [vmem:[%s1466_s7 + $0x18] sm:$0xff]   ;;  %v1085_v43 = vld [vmem:[%s1466_s7 + $0x10] sm:$0xff]   ;;  %v190_v44 = vld [vmem:[%s1463_s4] sm:$0x3] }
  0x3d   :  { %392 = vmatprep.subr.bf16.mxu1 %v1023_v45  ;;  %v195_v45 = vrot.slane %v190_v44, %v1374_v13  ;;  %v923_v11 = vld [vmem:[%s1467_s8] ss:$0 sm:$0xff] }
  0x3f   :  { %620 = vmatpush1.bf16.msra.mxu0 %v1038_v56 }
  0x40   :  { %393 = vmatpush2.bf16.msra.mxu1 %v1025_v46  ;;  %621 = vmatprep.subr.bf16.mxu0 %v1043_v57  ;;  %v199_v46 = vrot.slane %v190_v44, %v1379_v15  ;;  %v1086_v57 = vld [vmem:[%s1466_s7 + $0x48] sm:$0xff]  }
  0x41   :  { %940 = vmatprep.subr.bf16.mxu1 %v1074_v32 }
  0x43   :  { %622 = vmatpush1.bf16.msra.mxu0 %v1041_v58  ;;  %v1087_v58 = vld [vmem:[%s1466_s7 + $0x8] sm:$0xff]  }
  0x44   :  { %623 = vmatprep.subr.bf16.mxu0 %v1046_v59  ;;  %v1088_v59 = vld [vmem:[%s1466_s7 + $0x40] sm:$0xff]  }
  0x47   :  { %624 = vmatpush1.bf16.msra.mxu0 %v1044_v60  ;;  %v1089_v60 = vld [vmem:[%s1466_s7] sm:$0xff]  }
  0x48   :  { %625 = vmatprep.subr.bf16.mxu0 %v1049_v61  ;;  %v439_v61 = vld [vmem:[%s1465_s6] sm:$0x3]  ;;  %s1113_s6 = smov [#allocation2]  }
  0x49   :  { %s839_s0 = sshll.u32 %s1113_s6, 4  ;;  %s840_s0 = int_to_ptr.vmem [resolvable:$true] %s839_s0 }
  0x4a   :  { %s1090_s27 = scalar_lea.vmem %s840_s0, 128  ;;  %p1095_p1 = scmp.lt.s32.totalorder %s840_s0, %s840_s0 }
  0x4b   :  { %626 = vmatpush1.bf16.msra.mxu0 %v1047_v62  ;;  %v444_v62 = vrot.slane %v439_v61, %v1374_v13  ;;  %p1091_p0 = scmp.ne.s32.totalorder %s840_s0, %s1090_s27  ;;  %p1096_p2 = scmp.lt.s32.totalorder %s1090_s27, %s1090_s27 }
  0x4c   :  { %627 = vmatprep.subr.bf16.mxu0 %v1052_v63  ;;  %v448_v63 = vrot.slane %v439_v61, %v1379_v15 }
  0x4d   :  { %p1097_p3 = por %p1096_p2, %p1095_p1 }
  0x4f   :  { %628 = vmatpush2.bf16.msra.mxu0 %v1050_v0  ;;  %p1098_p4 = pnand %p1097_p3, %p1091_p0 }
  0x50   :  { %629 = vmatprep.subr.bf16.mxu0 %v1055_v1 }
  0x53   :  { %630 = vmatpush2.bf16.msra.mxu0 %v1053_v2 }
  0x54   :  { %631 = vmatprep.subr.bf16.mxu0 %v1058_v3 }
  0x57   :  { %632 = vmatpush2.bf16.msra.mxu0 %v1056_v4 }
  0x58   :  { %633 = vmatprep.subr.bf16.mxu0 %v1061_v5 }
  0x5b   :  { %634 = vmatpush2.bf16.msra.mxu0 %v1059_v6 }
  0x5c   :  { %635 = vmatprep.subr.bf16.mxu0 %v1064_v7 }
  0x5f   :  { %636 = vmatpush2.bf16.msra.mxu0 %v1062_v8 }
  0x60   :  { %637 = vmatprep.subr.bf16.mxu0 %v1067_v9 }
  0x63   :  { %638 = vmatpush2.bf16.msra.mxu0 %v1065_v10 }
  0x64   :  { %639 = vmatprep.subr.bf16.mxu0 %v1070_v28 }
  0x67   :  { %640 = vmatpush2.bf16.msra.mxu0 %v1068_v29 }
  0x68   :  { %641 = vmatprep.subr.bf16.mxu0 %v1073_v30 }
  0x6b   :  { %642 = vmatpush2.bf16.msra.mxu0 %v1071_v31 }
  0xd8   :  { %v147_v18 = vpop.f32.mrf.mxu0 }
  0xd9   :  { %v148_v19 = vadd.f32 %v147_v18, %v50_v16 }
  0xda   :  { %v149_v20 = vpop.f32.mrf.mxu0 }
  0xdb   :  { %v150_v21 = vadd.f32 %v149_v20, %v54_v17  ;;  %v154_v22 = vmax.f32 %v148_v19, 0.0 }
  0xdc   :  { %v151_v23 = vpop.f32.mrf.mxu0 }
  0xdd   :  { %v155_v24 = vmax.f32 %v150_v21, 0.0  ;;  %v156_v27 = vpack.c.bf16 %v154_v22, %v154_v22 }
  0xde   :  { %v152_v25 = vpop.f32.mrf.mxu0 }
  0xdf   :  { %v157_v26 = vpack.c.bf16 %v155_v24, %v155_v24 }
  0xe1   :  { %394 = vmatprep.mubr.bf16.mxu1 %v157_v26 }
  0xe2   :  { %395 = vmatmul.mubr.bf16.vlgmr.msra.gmra.mxu1 %v156_v27 }
  0xe3   :  { %941 = vmatpush3.bf16.msra.mxu1 %v1075_v33 }
  0xe4   :  { %942 = vmatprep.subr.bf16.mxu1 %v1076_v34 }
  0xe7   :  { %943 = vmatpush3.bf16.msra.mxu1 %v1077_v35 }
  0xe8   :  { %944 = vmatprep.subr.bf16.mxu1 %v1078_v36 }
  0xeb   :  { %945 = vmatpush3.bf16.msra.mxu1 %v1079_v37 }
  0xec   :  { %946 = vmatprep.subr.bf16.mxu1 %v1080_v38 }
  0xef   :  { %947 = vmatpush3.bf16.msra.mxu1 %v1081_v39 }
  0xf0   :  { %948 = vmatprep.subr.bf16.mxu1 %v1082_v40 }
  0xf3   :  { %949 = vmatpush3.bf16.msra.mxu1 %v1083_v41 }
  0xf4   :  { %950 = vmatprep.subr.bf16.mxu1 %v1084_v42 }
  0xf7   :  { %951 = vmatpush3.bf16.msra.mxu1 %v1085_v43 }
  0xf8   :  { %952 = vmatprep.subr.bf16.mxu1 %v1086_v57 }
  0xfb   :  { %953 = vmatpush3.bf16.msra.mxu1 %v1087_v58 }
  0xfc   :  { %954 = vmatprep.subr.bf16.mxu1 %v1088_v59 }
  0xff   :  { %955 = vmatpush3.bf16.msra.mxu1 %v1089_v60 }
 0x1a2   :  { %v396_v47 = vpop.f32.mrf.mxu1 }
 0x1a3   :  { %v397_v48 = vadd.f32 %v396_v47, %v195_v45 }
 0x1a4   :  { %v398_v49 = vpop.f32.mrf.mxu1 }
 0x1a5   :  { %v399_v50 = vadd.f32 %v398_v49, %v199_v46  ;;  %v403_v51 = vmax.f32 %v397_v48, 0.0 }
 0x1a6   :  { %v400_v52 = vpop.f32.mrf.mxu1 }
 0x1a7   :  { %v404_v53 = vmax.f32 %v399_v50, 0.0  ;;  %v405_v56 = vpack.c.bf16 %v403_v51, %v403_v51 }
 0x1a8   :  { %v401_v54 = vpop.f32.mrf.mxu1 }
 0x1a9   :  { %v406_v55 = vpack.c.bf16 %v404_v53, %v404_v53 }
 0x1ab   :  { %643 = vmatprep.mubr.bf16.mxu0 %v406_v55 }
 0x1ac   :  { %644 = vmatmul.mubr.bf16.vlgmr.msra.gmra.mxu0 %v405_v56 }
 0x26c   :  { %v645_v0 = vpop.f32.mrf.mxu0 }
 0x26d   :  { %v646_v1 = vadd.f32 %v645_v0, %v444_v62 }
 0x26e   :  { %v647_v2 = vpop.f32.mrf.mxu0 }
 0x26f   :  { %v648_v3 = vadd.f32 %v647_v2, %v448_v63  ;;  %v652_v4 = vmax.f32 %v646_v1, 0.0 }
 0x270   :  { %v649_v5 = vpop.f32.mrf.mxu0 }
 0x271   :  { %v653_v6 = vmax.f32 %v648_v3, 0.0  ;;  %v654_v9 = vpack.c.bf16 %v652_v4, %v652_v4 }
 0x272   :  { %v650_v7 = vpop.f32.mrf.mxu0 }
 0x273   :  { %v655_v8 = vpack.c.bf16 %v653_v6, %v653_v6 }
 0x275   :  { %823 = vmatprep.mubr.bf16.mxu1 %v655_v8 }
 0x276   :  { %824 = vmatmul.mubr.bf16.vlgmr.msra.gmra.mxu1 %v654_v9 }
 0x336   :  { %v956_v10 = vpop.f32.mrf.mxu1 }
 0x338   :  { %v957_v12 = vpop.f32.mrf.mxu1 }
 0x339   :  { %v958_v13 = vadd.f32 %v957_v12, %v956_v10 }
 0x33a   :  { %v959_v14 = vpop.f32.mrf.mxu1 }
 0x33b   :  { %v826_v15 = vadd.f32 %v958_v13, %v923_v11 }
 0x33c   :  { %v960_v16 = vpop.f32.mrf.mxu1 }
 0x33d   :  { %832 = vst.msk [vmem:[#allocation2] sm:$0xff] %vm831_vm2, %v826_v15 }
 0x33e   :  { %1101 = shalt.err (!%p1098_p4)
}
 0x33f   :  { %842 = dma.vmem_to_hbm [thread:$0]  %s840_s0, 128, %s1468_s9, [#allocation3]  }
 0x340   :  { %1110 = dma.done.wait [#allocation3], 128  }
 0x341   :  { %1111 = vsyncadd [#allocation3], 4294967168 }
 0x342   :  { %846 = vsyncpa [#allocation3], 1 }

</bundles_post_ra>
